<compile_context>
chip_gen: v6e
topology: v6e:2x2x1
jax: 0.10.0
libtpu: 0.0.40
codegen_flags: <defaults>
</compile_context>

<pallas_src>
import jax
import jax.numpy as jnp
from jax import lax
from jax.experimental import pallas as pl
from jax.experimental.pallas import tpu as pltpu

EPS = 1e-7                 # matches the EPS constant of the reference codebase
_NEG = -1e30               # "minus infinity" for padded out_features columns
_SELECT_GATHER_MAX_NB = 8  # select-chain gather up to here, one-hot matmul above


def _round_up(x: int, m: int) -> int:
    return (x + m - 1) // m * m


# --------------------------------------------------------------------------
# kernel
# --------------------------------------------------------------------------
def decoder_kernel(u_ref, b_ref, l_ref, vt_ref, scale_ref, bias_ref, lt_ref,
                   logits_ref):
    # u_ref: (TM, Kp); b_ref/l_ref: (TM, 1); vt_ref: (Kp, Op);
    # scale_ref / bias_ref / lt_ref: (NB, Op); logits_ref: (TM, Op)
    tm = u_ref.shape[0]
    nb = scale_ref.shape[0]

    bidx = b_ref[...]                                   # (TM, 1) int32

    def gather_rows(param_ref):
        """Per-row gather of an (NB, Op) parameter according to bidx."""
        p = param_ref[...]
        if nb == 1:
            return p                                    # (1, Op) broadcasts below
        if nb <= _SELECT_GATHER_MAX_NB:
            # VPU select chain: a handful of vselects, zero MXU work.
            acc = p[0:1, :]
            for k in range(1, nb):
                acc = jnp.where(bidx == k, p[k:k + 1, :], acc)
            return acc                                  # (TM, Op)
        # Large NB: one-hot matmul gather on the MXU.
        iota = lax.broadcasted_iota(jnp.int32, (tm, nb), 1)
        one_hot = (bidx == iota).astype(jnp.float32)
        return jnp.dot(one_hot, p, preferred_element_type=jnp.float32)

    # Main matmul: u @ v.T with the weight pre-transposed to (K, Op) by the
    # wrapper -> MXU gets its native stationary layout, no in-kernel XLU work.
    xv = jnp.dot(u_ref[...], vt_ref[...], preferred_element_type=jnp.float32)

    scale_b = gather_rows(scale_ref)     # softplus already applied (wrapper)
    bias_b = gather_rows(bias_ref)
    logit_mu = scale_b * xv + bias_b     # padded cols: bias = -1e30 -> exp()==0

    # Row-wise softmax over out_features (whole axis lives inside this tile).
    m = jnp.max(logit_mu, axis=1, keepdims=True)
    e = jnp.exp(logit_mu - m)
    s = jnp.sum(e, axis=1, keepdims=True)
    row_scale = l_ref[...] / s           # single exact (TM, 1) divide
    mu = e * row_scale

    # log_theta is only needed here in the epilogue; gathering it late keeps
    # the pre-softmax working set small.
    log_theta_b = gather_rows(lt_ref)
    logits_ref[...] = jnp.log(mu + EPS) - log_theta_b


# --------------------------------------------------------------------------
# wrapper helpers
# --------------------------------------------------------------------------
def _const_block_spec(shape):
    """Constant-index block (fetched once) -> single-buffer it to save VMEM."""
    index_map = lambda i: (0, 0)
    try:
        return pl.BlockSpec(shape, index_map, pipeline_mode=pl.Buffered(1))
    except Exception:  # older jax without pipeline_mode: fall back to default
        return pl.BlockSpec(shape, index_map)


def _vmem_capacity_bytes() -> int:
    try:
        return int(pltpu.get_tpu_info().vmem_capacity_bytes)
    except Exception:
        return 64 * 1024 * 1024          # conservative (v7x-sized) fallback


def _pick_tm(n_rows: int, kp: int, op: int, nb: int,
             vmem_capacity: int, tm_req: int) -> int:
    """VMEM-aware row-tile size; keeps >=2 grid steps for v7x megacore."""
    budget = vmem_capacity // 2                       # keep ~half as headroom
    fixed = kp * op * 4 + 3 * nb * op * 4             # single-buffered constants
    # out (2x), u (2x), ~8 live f32 (tm,Op) temporaries, b/l rows
    per_row = 2 * op * 4 + 2 * kp * 4 + 32 * op + 16
    avail = max(budget - fixed, 8 * per_row)
    tm = max(8, (avail // per_row) // 8 * 8)
    rows8 = _round_up(n_rows, 8)
    tm = min(tm, tm_req, rows8)
    if rows8 >= 16:                                   # >= 2 grid steps
        tm = min(tm, _round_up(rows8 // 2, 8))
    # TODO(synk): for out_features so large that even tm=8 exceeds the budget,
    # an Op grid axis with an online-softmax accumulator would be needed.
    return max(int(tm), 8)


# --------------------------------------------------------------------------
# forward
# --------------------------------------------------------------------------
def decoder_forward(u, b, l, v, scale_lin, bias, log_theta, *,
                    tm=512, use_bf16_matmul=False):
    """Pallas forward of the sckade Decoder.

    Returns (theta, logits):
      theta  : (NB, O) = exp(log_theta); NegativeBinomial total_count = theta[b]
      logits : (N, O)  = log(mu + EPS) - log_theta[b]
    theta is kept factored (NB, O) so no (N, O) broadcast is written to HBM.
    """
    N, K = u.shape
    O = v.shape[0]
    NB = scale_lin.shape[0]

    if l is None:
        l = jnp.ones((N, 1), dtype=jnp.float32)

    # --- padding / tiling ----------------------------------------------------
    Kp = _round_up(K, 128)                  # lane-dense contraction
    Op = _round_up(O, 128)                  # lane-dense output columns
    vmem_capacity = _vmem_capacity_bytes()
    tm_eff = _pick_tm(N, Kp, Op, NB, vmem_capacity, tm)
    N_pad = _round_up(N, tm_eff)

    mm_dtype = jnp.bfloat16 if use_bf16_matmul else jnp.float32

    u_p = jnp.pad(u.astype(jnp.float32),
                  ((0, N_pad - N), (0, Kp - K))).astype(mm_dtype)
    b_p = jnp.pad(b.astype(jnp.int32).reshape(N, 1), ((0, N_pad - N), (0, 0)))
    l_p = jnp.pad(l.reshape(N, 1).astype(jnp.float32),
                  ((0, N_pad - N), (0, 0)), constant_values=1.0)
    # Weight pre-transposed once by XLA to (K, Op): MXU-native layout.
    v_t = jnp.pad(v.astype(jnp.float32).T,
                  ((0, Kp - K), (0, Op - O))).astype(mm_dtype)

    # Transcendentals hoisted out of the kernel (gather commutes with them).
    scale_p = jnp.pad(jax.nn.softplus(scale_lin.astype(jnp.float32)),
                      ((0, 0), (0, Op - O)))
    bias_p = jnp.pad(bias.astype(jnp.float32), ((0, 0), (0, Op - O)),
                     constant_values=_NEG)          # padded cols -> exp() == 0
    log_theta_p = jnp.pad(log_theta.astype(jnp.float32),
                          ((0, 0), (0, Op - O)))

    # --- pallas call ---------------------------------------------------------
    logits_pad = pl.pallas_call(
        decoder_kernel,
        out_shape=jax.ShapeDtypeStruct((N_pad, Op), jnp.float32),
        grid_spec=pltpu.PrefetchScalarGridSpec(
            num_scalar_prefetch=0,
            grid=(N_pad // tm_eff,),
            in_specs=[
                pl.BlockSpec((tm_eff, Kp), lambda i: (i, 0)),   # u rows
                pl.BlockSpec((tm_eff, 1), lambda i: (i, 0)),    # b rows
                pl.BlockSpec((tm_eff, 1), lambda i: (i, 0)),    # l rows
                _const_block_spec((Kp, Op)),                    # v.T (whole)
                _const_block_spec((NB, Op)),                    # softplus(scale_lin)
                _const_block_spec((NB, Op)),                    # bias
                _const_block_spec((NB, Op)),                    # log_theta
            ],
            out_specs=pl.BlockSpec((tm_eff, Op), lambda i: (i, 0)),
        ),
        compiler_params=pltpu.CompilerParams(
            dimension_semantics=("parallel",),
            vmem_limit_bytes=int(vmem_capacity * 0.8),  # per-generation cap
        ),
    )(u_p, b_p, l_p, v_t, scale_p, bias_p, log_theta_p)

    logits = logits_pad[:N, :O]

    # TODO(synk): the torch.distributions.NegativeBinomial object itself has
    # no tensor equivalent; its parameters are (theta[b], logits).
    theta = jnp.exp(log_theta.astype(jnp.float32))      # (NB, O)
    return theta, logits


# --------------------------------------------------------------------------
# pure-JAX reference + test
# --------------------------------------------------------------------------
def decoder_reference(u, b, l, v, scale_lin, bias, log_theta):
    scale = jax.nn.softplus(scale_lin[b])
    logit_mu = scale * (u @ v.T) + bias[b]
    mu = jax.nn.softmax(logit_mu, axis=1) * l.reshape(-1, 1)
    log_theta_b = log_theta[b]
    total_count = jnp.exp(log_theta_b)
    logits = jnp.log(mu + EPS) - log_theta_b
    return total_count, logits


if __name__ == "__main__":
    key = jax.random.PRNGKey(0)
    N, K, O, NB = 16, 32, 64, 2  # rows, in_features, out_features, n_batches

    k1, k2, k3, k4, k5, k6, k7 = jax.random.split(key, 7)
    u = jax.random.normal(k1, (N, K), dtype=jnp.float32)
    b = jax.random.randint(k2, (N,), 0, NB, dtype=jnp.int32)
    l = jax.random.uniform(k3, (N, 1), dtype=jnp.float32) * 1000.0 + 1.0

    # Module __init__ zero-inits the params; use small deterministic random
    # values instead so the test exercises non-trivial numerics.
    v = jax.random.normal(k4, (O, K), dtype=jnp.float32) * 0.1
    scale_lin = jax.random.normal(k5, (NB, O), dtype=jnp.float32) * 0.1
    bias = jax.random.normal(k6, (NB, O), dtype=jnp.float32) * 0.1
    log_theta = jax.random.normal(k7, (NB, O), dtype=jnp.float32) * 0.1

    theta, logits = decoder_forward(u, b, l, v, scale_lin, bias, log_theta)
    jax.block_until_ready((theta, logits))

    total_count = theta[b]                    # (N, O) only for verification
    tc_ref, lg_ref = decoder_reference(u, b, l, v, scale_lin, bias, log_theta)
    assert jnp.allclose(total_count, tc_ref, atol=1e-5, rtol=1e-5)
    assert jnp.allclose(logits, lg_ref, atol=1e-4, rtol=1e-4)

    print("KERNEL_OK")
</pallas_src>

<mosaic_0001>
module attributes {stable_mosaic.version = 11 : i64} {
  func.func @decoder_kernel(%arg0: i32, %arg1: memref<8x128xf32, #tpu.memory_space<vmem>>, %arg2: memref<8x1xi32, #tpu.memory_space<vmem>>, %arg3: memref<8x1xf32, #tpu.memory_space<vmem>>, %arg4: memref<128x128xf32, #tpu.memory_space<vmem>>, %arg5: memref<2x128xf32, #tpu.memory_space<vmem>>, %arg6: memref<2x128xf32, #tpu.memory_space<vmem>>, %arg7: memref<2x128xf32, #tpu.memory_space<vmem>>, %arg8: memref<8x128xf32, #tpu.memory_space<vmem>>) attributes {dimension_semantics = [#tpu.dimension_semantics<parallel>], iteration_bounds = array<i64: 2>, scalar_prefetch = 0 : i64, scratch_operands = 0 : i64, tpu.core_type = #tpu.core_type<tc>, window_params = [{transform_indices = @transform_0, window_bounds = array<i64: 8, 128>}, {transform_indices = @transform_1, window_bounds = array<i64: 8, 1>}, {transform_indices = @transform_2, window_bounds = array<i64: 8, 1>}, {pipeline_mode = #tpu.pipeline_mode<synchronous>, transform_indices = @transform_3, window_bounds = array<i64: 128, 128>}, {pipeline_mode = #tpu.pipeline_mode<synchronous>, transform_indices = @transform_4, window_bounds = array<i64: 2, 128>}, {pipeline_mode = #tpu.pipeline_mode<synchronous>, transform_indices = @transform_5, window_bounds = array<i64: 2, 128>}, {pipeline_mode = #tpu.pipeline_mode<synchronous>, transform_indices = @transform_6, window_bounds = array<i64: 2, 128>}, {transform_indices = @transform_7, window_bounds = array<i64: 8, 128>}]} {
    %c0 = arith.constant 0 : index
    %c0_0 = arith.constant 0 : index
    %0 = vector.load %arg2[%c0, %c0_0] : memref<8x1xi32, #tpu.memory_space<vmem>>, vector<8x1xi32>
    %c0_1 = arith.constant 0 : index
    %c0_2 = arith.constant 0 : index
    %1 = vector.load %arg1[%c0_1, %c0_2] : memref<8x128xf32, #tpu.memory_space<vmem>>, vector<8x128xf32>
    %c0_3 = arith.constant 0 : index
    %c0_4 = arith.constant 0 : index
    %2 = vector.load %arg4[%c0_3, %c0_4] : memref<128x128xf32, #tpu.memory_space<vmem>>, vector<128x128xf32>
    %cst = arith.constant dense<0.000000e+00> : vector<8x128xf32>
    %3 = tpu.matmul %1, %2, %cst {dimension_numbers = #tpu.dot_dimension_numbers<[1], [0], [0], [1], [0, 0, 1, 1], [], []>} : vector<8x128xf32>, vector<128x128xf32>, vector<8x128xf32> -> vector<8x128xf32>
    %c0_5 = arith.constant 0 : index
    %c0_6 = arith.constant 0 : index
    %4 = vector.load %arg5[%c0_5, %c0_6] : memref<2x128xf32, #tpu.memory_space<vmem>>, vector<2x128xf32>
    %5 = vector.extract_strided_slice %4 {offsets = [0, 0], sizes = [1, 128], strides = [1, 1]} : vector<2x128xf32> to vector<1x128xf32>
    %c1_i32 = arith.constant 1 : i32
    %6 = vector.broadcast %c1_i32 : i32 to vector<8x1xi32>
    %7 = arith.cmpi eq, %0, %6 : vector<8x1xi32>
    %8 = vector.extract_strided_slice %4 {offsets = [1, 0], sizes = [1, 128], strides = [1, 1]} : vector<2x128xf32> to vector<1x128xf32>
    %9 = vector.shape_cast %7 : vector<8x1xi1> to vector<8x1xi1>
    %10 = vector.broadcast %9 : vector<8x1xi1> to vector<8x128xi1>
    %11 = vector.shape_cast %8 : vector<1x128xf32> to vector<1x128xf32>
    %12 = vector.broadcast %11 : vector<1x128xf32> to vector<8x128xf32>
    %13 = vector.shape_cast %5 : vector<1x128xf32> to vector<1x128xf32>
    %14 = vector.broadcast %13 : vector<1x128xf32> to vector<8x128xf32>
    %15 = arith.select %10, %12, %14 : vector<8x128xi1>, vector<8x128xf32>
    %c0_7 = arith.constant 0 : index
    %c0_8 = arith.constant 0 : index
    %16 = vector.load %arg6[%c0_7, %c0_8] : memref<2x128xf32, #tpu.memory_space<vmem>>, vector<2x128xf32>
    %17 = vector.extract_strided_slice %16 {offsets = [0, 0], sizes = [1, 128], strides = [1, 1]} : vector<2x128xf32> to vector<1x128xf32>
    %c1_i32_9 = arith.constant 1 : i32
    %18 = vector.broadcast %c1_i32_9 : i32 to vector<8x1xi32>
    %19 = arith.cmpi eq, %0, %18 : vector<8x1xi32>
    %20 = vector.extract_strided_slice %16 {offsets = [1, 0], sizes = [1, 128], strides = [1, 1]} : vector<2x128xf32> to vector<1x128xf32>
    %21 = vector.shape_cast %19 : vector<8x1xi1> to vector<8x1xi1>
    %22 = vector.broadcast %21 : vector<8x1xi1> to vector<8x128xi1>
    %23 = vector.shape_cast %20 : vector<1x128xf32> to vector<1x128xf32>
    %24 = vector.broadcast %23 : vector<1x128xf32> to vector<8x128xf32>
    %25 = vector.shape_cast %17 : vector<1x128xf32> to vector<1x128xf32>
    %26 = vector.broadcast %25 : vector<1x128xf32> to vector<8x128xf32>
    %27 = arith.select %22, %24, %26 : vector<8x128xi1>, vector<8x128xf32>
    %28 = arith.mulf %15, %3 : vector<8x128xf32>
    %29 = arith.addf %28, %27 : vector<8x128xf32>
    %cst_10 = arith.constant dense<0xFF800000> : vector<8xf32>
    %30 = vector.multi_reduction <maximumf>, %29, %cst_10 [1] : vector<8x128xf32> to vector<8xf32>
    %31 = vector.shape_cast %30 : vector<8xf32> to vector<8x1xf32>
    %32 = vector.broadcast %31 : vector<8x1xf32> to vector<8x128xf32>
    %33 = arith.subf %29, %32 : vector<8x128xf32>
    %34 = math.exp %33 : vector<8x128xf32>
    %cst_11 = arith.constant dense<0.000000e+00> : vector<8xf32>
    %35 = vector.multi_reduction <add>, %34, %cst_11 [1] : vector<8x128xf32> to vector<8xf32>
    %36 = vector.shape_cast %35 : vector<8xf32> to vector<8x1xf32>
    %c0_12 = arith.constant 0 : index
    %c0_13 = arith.constant 0 : index
    %37 = vector.load %arg3[%c0_12, %c0_13] : memref<8x1xf32, #tpu.memory_space<vmem>>, vector<8x1xf32>
    %38 = arith.divf %37, %36 : vector<8x1xf32>
    %39 = vector.broadcast %38 : vector<8x1xf32> to vector<8x128xf32>
    %40 = arith.mulf %34, %39 : vector<8x128xf32>
    %c0_14 = arith.constant 0 : index
    %c0_15 = arith.constant 0 : index
    %41 = vector.load %arg7[%c0_14, %c0_15] : memref<2x128xf32, #tpu.memory_space<vmem>>, vector<2x128xf32>
    %42 = vector.extract_strided_slice %41 {offsets = [0, 0], sizes = [1, 128], strides = [1, 1]} : vector<2x128xf32> to vector<1x128xf32>
    %c1_i32_16 = arith.constant 1 : i32
    %43 = vector.broadcast %c1_i32_16 : i32 to vector<8x1xi32>
    %44 = arith.cmpi eq, %0, %43 : vector<8x1xi32>
    %45 = vector.extract_strided_slice %41 {offsets = [1, 0], sizes = [1, 128], strides = [1, 1]} : vector<2x128xf32> to vector<1x128xf32>
    %46 = vector.shape_cast %44 : vector<8x1xi1> to vector<8x1xi1>
    %47 = vector.broadcast %46 : vector<8x1xi1> to vector<8x128xi1>
    %48 = vector.shape_cast %45 : vector<1x128xf32> to vector<1x128xf32>
    %49 = vector.broadcast %48 : vector<1x128xf32> to vector<8x128xf32>
    %50 = vector.shape_cast %42 : vector<1x128xf32> to vector<1x128xf32>
    %51 = vector.broadcast %50 : vector<1x128xf32> to vector<8x128xf32>
    %52 = arith.select %47, %49, %51 : vector<8x128xi1>, vector<8x128xf32>
    %cst_17 = arith.constant 1.000000e-07 : f32
    %53 = vector.broadcast %cst_17 : f32 to vector<8x128xf32>
    %54 = arith.addf %40, %53 : vector<8x128xf32>
    %55 = math.log %54 : vector<8x128xf32>
    %56 = arith.subf %55, %52 : vector<8x128xf32>
    %c0_18 = arith.constant 0 : index
    %c0_19 = arith.constant 0 : index
    %57 = vector.load %arg8[%c0_18, %c0_19] : memref<8x128xf32, #tpu.memory_space<vmem>>, vector<8x128xf32>
    tpu.vector_store %arg8[%c0_18, %c0_19], %56 {strides = array<i32>} : memref<8x128xf32, #tpu.memory_space<vmem>>, vector<8x128xf32>,
    return
  }
  func.func @transform_0(%arg0: i32) -> (i32, i32) {
    %c0_i32 = arith.constant 0 : i32
    %c0_i32_0 = arith.constant 0 : i32
    return %arg0, %c0_i32 : i32, i32
  }
  func.func @transform_1(%arg0: i32) -> (i32, i32) {
    %c0_i32 = arith.constant 0 : i32
    %c0_i32_0 = arith.constant 0 : i32
    return %arg0, %c0_i32 : i32, i32
  }
  func.func @transform_2(%arg0: i32) -> (i32, i32) {
    %c0_i32 = arith.constant 0 : i32
    %c0_i32_0 = arith.constant 0 : i32
    return %arg0, %c0_i32 : i32, i32
  }
  func.func @transform_3(%arg0: i32) -> (i32, i32) {
    %c0_i32 = arith.constant 0 : i32
    %c0_i32_0 = arith.constant 0 : i32
    %c0_i32_1 = arith.constant 0 : i32
    return %c0_i32, %c0_i32_0 : i32, i32
  }
  func.func @transform_4(%arg0: i32) -> (i32, i32) {
    %c0_i32 = arith.constant 0 : i32
    %c0_i32_0 = arith.constant 0 : i32
    %c0_i32_1 = arith.constant 0 : i32
    return %c0_i32, %c0_i32_0 : i32, i32
  }
  func.func @transform_5(%arg0: i32) -> (i32, i32) {
    %c0_i32 = arith.constant 0 : i32
    %c0_i32_0 = arith.constant 0 : i32
    %c0_i32_1 = arith.constant 0 : i32
    return %c0_i32, %c0_i32_0 : i32, i32
  }
  func.func @transform_6(%arg0: i32) -> (i32, i32) {
    %c0_i32 = arith.constant 0 : i32
    %c0_i32_0 = arith.constant 0 : i32
    %c0_i32_1 = arith.constant 0 : i32
    return %c0_i32, %c0_i32_0 : i32, i32
  }
  func.func @transform_7(%arg0: i32) -> (i32, i32) {
    %c0_i32 = arith.constant 0 : i32
    %c0_i32_0 = arith.constant 0 : i32
    return %arg0, %c0_i32 : i32, i32
  }
}

</mosaic_0001>

<bundles_post_ra>
// kernel: tpu_custom_call.1
= control target key start
LH: loop header
LB: loop body
LE: loop exit
PB: predicated region body
PF: predicated region fallthrough
CT: control target
= control target key end

     0   :  { %12 = vsyncpa [#allocation3], 0  ;;  %s975_s0 = inlined_call_operand.vmem [shape: f32[16,128], index: 0, kind: input, shape index: {}]   ;;  %s976_s1 = inlined_call_operand.vmem [shape: s32[16,1], index: 1, kind: input, shape index: {}]   ;;  %s977_s2 = inlined_call_operand.vmem [shape: f32[16,1], index: 2, kind: input, shape index: {}]   ;;  %s978_s3 = inlined_call_operand.hbm [shape: f32[128,128], index: 3, kind: input, shape index: {}]   ;;  %s979_s4 = inlined_call_operand.vmem [shape: f32[2,128], index: 4, kind: input, shape index: {}]   ;;  %s980_s5 = inlined_call_operand.vmem [shape: f32[2,128], index: 5, kind: input, shape index: {}]   ;;  %s981_s6 = inlined_call_operand.vmem [shape: f32[2,128], index: 6, kind: input, shape index: {}]   ;;  %s982_s7 = inlined_call_operand.hbm [shape: f32[16,128], index: 7, kind: output, shape index: {}]  }
   0x1   :  { %13 = vsyncpa [#allocation4], 0 }
   0x2   :  { %15 = vsyncpa [#allocation4 + $0x1], 0  ;;  %s847_s24 = smov 0   ;;  %s849_s25 = smov 0  }
   0x3   :  { %s851_s26 = smov 0   ;;  %s853_s27 = smov 0  }
   0x4 LB: > { %s868_s28 = sadd.s32 4294967295, %s798_s27   ;;  %s579_s29 = sadd.s32 4294967294, %s798_s27   ;;  %s798_s27 = sphi %s853_s27, %s990_s27   ;;  %s794_s26 = sphi %s851_s26, %s989_s26   ;;  %s790_s25 = sphi %s849_s25, %s988_s25   ;;  %s786_s24 = sphi %s847_s24, %s987_s24  }
   0x5   : > { %s872_s30 = sadd.s32 1, %s798_s27   ;;  %s190_s8 = sadd.s32 1, %s794_s26 }
   0x6   : > { %s187_s9 = ssub.s32 %s798_s27, %s872_s30  ;;  %p200_p0 = scmp.ne.s32.totalorder %s794_s26, %s790_s25 }
   0x7   : > { %p188_p1 = scmp.eq.s32.totalorder %s187_s9, 0  ;;  %p201_p2 = scmp.eq.s32.totalorder %s868_s28, 1 }
   0x8   : > { %p206_p3 = scmp.ne.s32.totalorder %s790_s25, %s786_s24  ;;  %p207_p4 = scmp.eq.s32.totalorder %s579_s29, 1 }
   0x9   : > { %s883_s10 = scalar_select %p188_p1, %s794_s26, %s190_s8  }
   0xa   : > { %p885_p5 = por %p201_p2, %p200_p0  ;;  %p889_p6 = por %p207_p4, %p206_p3 }
   0xb   : > { %p580_p7 = scmp.ge.s32.totalorder %s798_s27, 1  ;;  %p214_p8 = scmp.lt.s32.totalorder %s798_s27, 3 }
   0xc   : > { %s984_s12 = scalar_select %p889_p6, 1, 0 }
   0xd   : > { %p659_p9 = scmp.eq.s32.totalorder %s868_s28, 0  ;;  %p896_p10 = pnand %p580_p7, %p214_p8 }
   0xe   : > { %s800_s14 = smov [#allocation2]  }
   0xf   : > { %s226_s15 = sshll.u32 %s800_s14, 4  ;;  %p651_p11 = pneg %p896_p10  ;;  %s227_s15 = int_to_ptr.vmem [resolvable:$true] %s226_s15 }
  0x10   : > { %s719_s16 = scalar_lea.vmem %s227_s15, 2048  ;;  %p727_p3 = scmp.lt.s32.totalorder %s227_s15, %s227_s15 }
  0x11   : > { %p652_p12 = pnand %p659_p9, %p651_p11  ;;  %p720_p0 = scmp.ne.s32.totalorder %s227_s15, %s719_s16 }
  0x12   : > { %p728_p4 = scmp.lt.s32.totalorder %s719_s16, %s719_s16 }
  0x13   : > { %p710_p13 = pneg %p652_p12 }
  0x14   : > { %p729_p6 = por %p728_p4, %p727_p3 }
  0x15   : > { %p722_p1 = pnand %p720_p0, %p710_p13 }
  0x17   : > { %p723_p2 = pneg %p722_p1 }
  0x19   : > { %p730_p7 = pnand %p729_p6, %p723_p2 }
  0x1b   : > { %733 = shalt.err (!%p730_p7)
}
  0x1c   : > { %s801_s17 = smov 128   ;;  %s802_s18 = smov 8  }
  0x1d   : > { %654 = dma.hbm_to_vmem [thread:$0]  (!%p652_p12), %s978_s3, 2048, %s227_s15, [#allocation3], %s801_s17, %s801_s17, %s802_s18  }
  0x1e   : > { %272 = sbr.rel (%p896_p10) target bundleno = 736 (0x2e0), region = 48 }
  0x23   : > { %777 = dma.done.wait (%p659_p9), [#allocation3], 2048  }
  0x24   : > { %779 = vsyncadd (%p659_p9), [#allocation3], 4294965248  ;;  %p311_p8 = scmp.lt.s32.totalorder %s868_s28, 1  ;;  %v803_v0 = vmov 0.0   ;;  %vm804_vm0 = vmmov 0   ;;  %v805_v1 = vmov 0   ;;  %v418_v21 = vlaneseq }
  0x25   : > { %610 = vmatprep.subr.mxu0 %v803_v0  ;;  %642 = vmatprep.mubr.msk.f32.mxu0 %vm804_vm0, %v803_v0  ;;  %v340_v2 = vld [vmem:[#allocation2 + $0x78] sm:$0xff]  ;;  %v339_v3 = vld [vmem:[#allocation2 + $0x70] sm:$0xff]  ;;  %v338_v4 = vld [vmem:[#allocation2 + $0x68] sm:$0xff]  ;;  %s308_s23 = sand.u32 1, %s790_s25   ;;  %s590_s13 = sshll.u32 %s868_s28, 7 }
  0x26   : > { %700 = vset.pattern.permute.xlu0 %v805_v1  ;;  %701 = vset.pattern.permute.xlu1 %v805_v1  ;;  %s312_s21 = scalar_select %p311_p8, %s868_s28, 1  ;;  %v337_v5 = vld [vmem:[#allocation2 + $0x60] sm:$0xff]  ;;  %v336_v7 = vld [vmem:[#allocation2 + $0x58] sm:$0xff]  ;;  %v335_v9 = vld [vmem:[#allocation2 + $0x50] sm:$0xff]  ;;  %v419_v22 = vshrl.u32 %v418_v21, 7 }
  0x27   : > { %611 = vmatpush3.msra.mxu0 %v340_v2  ;;  %v334_v10 = vld [vmem:[#allocation2 + $0x48] sm:$0xff]  ;;  %v333_v11 = vld [vmem:[#allocation2 + $0x40] sm:$0xff]  ;;  %v332_v12 = vld [vmem:[#allocation2 + $0x38] sm:$0xff]  ;;  %s585_s29 = sshll.u32 %s308_s23, 3  ;;  %s482_s17 = scalar_lea.hbm %s982_s7, %s590_s13 }
  0x28   : > { %s915_s22 = sshll.u32 %s312_s21, 3  ;;  %612 = vmatprep.subr.mxu0 %v803_v0  ;;  %v331_v13 = vld [vmem:[#allocation2 + $0x30] sm:$0xff]  ;;  %v330_v14 = vld [vmem:[#allocation2 + $0x28] sm:$0xff]  ;;  %v329_v15 = vld [vmem:[#allocation2 + $0x20] sm:$0xff]  ;;  %v420_v23 = vsub.s32 1, %v419_v22  ;;  %v424_v24 = vsub.s32 0, %v419_v22 }
  0x29   : > { %s318_s8 = scalar_lea.vmem %s976_s1, %s915_s22  ;;  %613 = vmatpush3.msra.mxu0 %v339_v3  ;;  %v328_v16 = vld [vmem:[#allocation2 + $0x18] sm:$0xff]  ;;  %v327_v17 = vld [vmem:[#allocation2 + $0x10] sm:$0xff]  ;;  %v326_v18 = vld [vmem:[#allocation2 + $0x8] sm:$0xff]  ;;  %s314_s14 = scalar_lea.vmem %s975_s0, %s915_s22 }
  0x2a   : > { %614 = vmatprep.subr.mxu0 %v803_v0  ;;  %v323_v6 = vld [vmem:[%s318_s8] sm:$0xff]  ;;  %s322_s21 = scalar_lea.vmem %s977_s2, %s915_s22  ;;  %s310_s22 = scalar_lea.vmem [#allocation5], %s585_s29 }
  0x2b   : > { %615 = vmatpush3.msra.mxu0 %v338_v4  ;;  %vm412_vm1 = vcmp.eq.s32.totalorder %v323_v6, 1  ;;  %v325_v19 = vld [vmem:[#allocation2] sm:$0xff]  ;;  %s471_s18 = scalar_lea.sflag [#allocation4], %s308_s23  ;;  %s806_s20 = smov [#allocation5]  }
  0x2c   : > { %616 = vmatprep.subr.mxu0 %v803_v0  ;;  %v413_v8 = vsel %vm412_vm1, 1, %v805_v1  ;;  %v324_v20 = vld [vmem:[%s314_s14] sm:$0xff]  ;;  %s484_s14 = sshll.u32 %s310_s22, 4  ;;  %s738_s28 = sshll.u32 %s806_s20, 4  ;;  %s485_s14 = int_to_ptr.vmem [resolvable:$true] %s484_s14  ;;  %s739_s28 = int_to_ptr.vmem [resolvable:$false] %s738_s28 }
  0x2d   : > { %617 = vmatpush3.msra.mxu0 %v337_v5  ;;  %415 = vperm.xlu0 %700, %v413_v8   ;;  %v411_v25 = vld [vmem:[%s979_s4] sm:$0x3]  ;;  %s734_s19 = scalar_lea.vmem %s485_s14, 128  ;;  %p741_p11 = scmp.lt.s32.totalorder %s485_s14, %s739_s28 }
  0x2e   : > { %618 = vmatprep.subr.mxu0 %v803_v0  ;;  %v421_v27 = vrot.slane %v411_v25, %v420_v23  ;;  %v425_v28 = vrot.slane %v411_v25, %v424_v24  ;;  %v427_v29 = vld [vmem:[%s980_s5] sm:$0x3]  ;;  %p735_p6 = scmp.ne.s32.totalorder %s485_s14, %s734_s19 }
  0x2f   : > { %619 = vmatpush3.msra.mxu0 %v336_v7  ;;  %v431_v31 = vrot.slane %v427_v29, %v420_v23  ;;  %v435_v32 = vrot.slane %v427_v29, %v424_v24  ;;  %v446_v43 = vld [vmem:[%s322_s21] sm:$0xff]  ;;  %s740_s21 = scalar_lea.vmem %s739_s28, 256 }
  0x30   : > { %620 = vmatprep.subr.mxu0 %v803_v0  ;;  %v455_v49 = vld [vmem:[%s981_s6] sm:$0x3]  ;;  %p736_p9 = pnand %p735_p6, %p885_p5  ;;  %p742_p12 = scmp.lt.s32.totalorder %s740_s21, %s734_s19 }
  0x31   : > { %621 = vmatpush3.msra.mxu0 %v335_v9  ;;  %v459_v50 = vrot.slane %v455_v49, %v420_v23  ;;  %v463_v51 = vrot.slane %v455_v49, %v424_v24 }
  0x32   : > { %622 = vmatprep.subr.mxu0 %v803_v0  ;;  %p737_p10 = pneg %p736_p9  ;;  %p743_p13 = por %p742_p12, %p741_p11 }
  0x33   : > { %623 = vmatpush3.msra.mxu0 %v334_v10 }
  0x34   : > { %624 = vmatprep.subr.mxu0 %v803_v0  ;;  %p744_p0 = pnand %p743_p13, %p737_p10 }
  0x35   : > { %625 = vmatpush3.msra.mxu0 %v333_v11 }
  0x36   : > { %626 = vmatprep.subr.mxu0 %v803_v0 }
  0x37   : > { %627 = vmatpush3.msra.mxu0 %v332_v12 }
  0x38   : > { %628 = vmatprep.subr.mxu0 %v803_v0 }
  0x39   : > { %629 = vmatpush3.msra.mxu0 %v331_v13 }
  0x3a   : > { %630 = vmatprep.subr.mxu0 %v803_v0 }
  0x3b   : > { %631 = vmatpush3.msra.mxu0 %v330_v14 }
  0x3c   : > { %632 = vmatprep.subr.mxu0 %v803_v0 }
  0x3d   : > { %633 = vmatpush3.msra.mxu0 %v329_v15 }
  0x3e   : > { %634 = vmatprep.subr.mxu0 %v803_v0 }
  0x3f   : > { %635 = vmatpush3.msra.mxu0 %v328_v16 }
  0x40   : > { %636 = vmatprep.subr.mxu0 %v803_v0 }
  0x41   : > { %637 = vmatpush3.msra.mxu0 %v327_v17 }
  0x42   : > { %638 = vmatprep.subr.mxu0 %v803_v0 }
  0x43   : > { %639 = vmatpush3.msra.mxu0 %v326_v18 }
  0x44   : > { %640 = vmatprep.subr.mxu0 %v803_v0 }
  0x45   : > { %641 = vmatpush3.msra.mxu0 %v325_v19 }
  0x46   : > { %643 = vmatmul.mubr.f32.vlgmr.msra.gmra.mxu0 %v324_v20 }
  0xa8   : > { %v416_v26 = vpop.permute.xlu0 %415 }
  0xa9   : > { %vm417_vm2 = vcmp.eq.s32.totalorder %v416_v26, 1 }
  0xaa   : > { %v426_v30 = vsel %vm417_vm2, %v421_v27, %v425_v28  ;;  %v436_v36 = vsel %vm417_vm2, %v431_v31, %v435_v32  ;;  %v464_v54 = vsel %vm417_vm2, %v459_v50, %v463_v51 }
 0x106   : > { %v407_v33 = vpop.f32.mrf.mxu0 }
 0x107   : > { %v437_v34 = vmul.f32 %v426_v30, %v407_v33 }
 0x108   : > { %v644_v35 = vpop.f32.mrf.mxu0 }
 0x109   : > { %v438_v37 = vadd.f32 %v437_v34, %v436_v36 }
 0x10b   : > { %439 = vmax.xlane.f32.xlu0 %v438_v37 }
 0x194   : > { %v440_v38 = vpop.xlane.xlu0 %439 }
 0x195   : > { %v441_v39 = vsub.f32 %v438_v37, %v440_v38 }
 0x197   : > { %v442_v40 = vmul.f32 1.442695, %v441_v39 }
 0x199   : > { %702 = vpow2.f32 %v442_v40 }
 0x1a6   : > { %v703_v41 = vpop.eup %702 }
 0x1a7   : > { %444 = vadd.xlane.f32.xlu1 %v703_v41 }
 0x230   : > { %v445_v42 = vpop.xlane.xlu1 %444 }
 0x231   : > { %704 = vrcp.f32 %v445_v42 }
 0x23e   : > { %v705_v44 = vpop.eup %704 }
 0x23f   : > { %v448_v45 = vmul.f32 %v705_v44, %v446_v43 }
 0x241   : > { %451 = vperm.xlu1 %701, %v448_v45  }
 0x2bc   : > { %v452_v46 = vpop.permute.xlu1 %451 }
 0x2bd   : > { %v454_v47 = vmul.f32 %v703_v41, %v452_v46 }
 0x2bf   : > { %v465_v48 = vadd.f32 1e-07, %v454_v47 }
 0x2c1   : > { %706 = vlog2.f32 %v465_v48 }
 0x2ce   : > { %v707_v52 = vpop.eup %706 }
 0x2cf   : > { %v467_v53 = vmul.f32 0.6931472, %v707_v52 }
 0x2d1   : > { %v468_v55 = vsub.f32 %v467_v53, %v464_v54 }
 0x2d3   : > { %469 = vst [vmem:[%s310_s22] sm:$0xff] %v468_v55 }
 0x2d4   : > { %747 = shalt.err (!%p744_p0)
}
 0x2d5   : > { %s748_s29 = scalar_lea.hbm %s482_s17, 128  ;;  %s752_s9 = scalar_lea.hbm %s982_s7, 256 }
 0x2d6   : > { %p749_p1 = scmp.ne.s32.totalorder %s482_s17, %s748_s29  ;;  %p753_p4 = scmp.lt.s32.totalorder %s482_s17, %s982_s7 }
 0x2d7   : > { %p754_p7 = scmp.lt.s32.totalorder %s752_s9, %s748_s29 }
 0x2d8   : > { %p750_p2 = pnand %p749_p1, %p885_p5 }
 0x2d9   : > { %p755_p8 = por %p754_p7, %p753_p4 }
 0x2da   : > { %p751_p3 = pneg %p750_p2 }
 0x2dc   : > { %p756_p6 = pnand %p755_p8, %p751_p3 }
 0x2de   : > { %759 = shalt.err (!%p756_p6)
}
 0x2df   : > { %649 = dma.vmem_to_hbm [thread:$0]  (%p885_p5), %s485_s14, 128, %s482_s17, %s471_s18  }
 0x2e0 PF: > { %p661_p9 = scmp.ge.s32.totalorder %s798_s27, 2  ;;  %s496_s15 = sand.u32 1, %s786_s24  }
 0x2e1   : > { %p986_p10 = scmp.ne.s32.totalorder %s984_s12, 0  ;;  %s497_s16 = scalar_lea.sflag [#allocation4], %s496_s15 }
 0x2e3   : > { %p656_p11 = pnand %p661_p9, %p986_p10 }
 0x2e5   : > { %p657_p12 = pneg %p656_p11 }
 0x2e7   : > { %781 = dma.done.wait (%p657_p12), %s497_s16, 128  }
 0x2e8   : > { %783 = vsyncadd (%p657_p12), %s497_s16, 4294967168  ;;  %p18_p13 = scmp.ge.s32.totalorder %s872_s30, 4   ;;  %s987_s24 = smov %s790_s25 }
 0x2e9   : > { %s988_s25 = smov %s794_s26  ;;  %s989_s26 = smov %s883_s10 }
 0x2ea   : > { %s990_s27 = smov %s872_s30  ;;  %20 = sbr.rel (!%p18_p13) target bundleno = 4 (0x4), region = 94 }
 0x2ef   :  { %502 = vsyncpa [#allocation3], 1 }
 0x2f0   :  { %504 = vsyncpa [#allocation3 + $0x1], 1 }
 0x2f1   :  { %505 = vsyncpa [#allocation4], 1 }
 0x2f2   :  { %507 = vsyncpa [#allocation4 + $0x1], 1 }

</bundles_post_ra>
